<compile_context>
chip_gen: v5e
topology: v5e:2x2
jax: 0.10.0
libtpu: 0.0.40
codegen_flags: <defaults>
</compile_context>

<pallas_src>
import jax
import jax.numpy as jnp
import numpy as np
from jax.experimental import pallas as pl
from jax.experimental.pallas import tpu as pltpu

EOS_TOKEN_ID = 2
PAD_TOKEN_ID = 0
NUM_CLASSES = 2
LANE = 128  # pad the class axis to a full vreg lane width


def defect_head_kernel(vec_ref, labels_ref, w_ref, bias_ref, out_ref):
    """One grid step == TB batch rows.

    vec_ref    : (TB, H)   bf16 gathered last-EOS hidden rows
    labels_ref : (TB, 1)   int32 labels
    w_ref      : (H, LANE) bf16 classifier weight, zero-padded from (H, 2)
    bias_ref   : (1, LANE) f32 classifier bias, zero-padded from (2,)
    out_ref    : (TB, LANE) f32; lanes [0:2] = softmax probs, lane 2 = NLL
    """
    tb = vec_ref.shape[0]

    # bf16 x bf16 MXU matmul with f32 accumulation.
    logits = jnp.dot(vec_ref[...], w_ref[...],
                     preferred_element_type=jnp.float32) + bias_ref[...]     # (TB, LANE)

    cls = jax.lax.broadcasted_iota(jnp.int32, (tb, LANE), 1)
    valid = cls < NUM_CLASSES

    # Softmax over the 2 real classes (padded lanes masked out).
    masked = jnp.where(valid, logits, jnp.float32(-1e30))
    m = jnp.max(masked, axis=-1, keepdims=True)                              # (TB, 1)
    e = jnp.where(valid, jnp.exp(masked - m), 0.0)
    denom = jnp.sum(e, axis=-1, keepdims=True)                               # (TB, 1)
    prob = e / denom                                                         # (TB, LANE)

    # Per-example cross-entropy: lse - logit[label] (only valid lanes picked).
    lse = m + jnp.log(denom)                                                 # (TB, 1)
    label = labels_ref[...]                                                  # (TB, 1)
    picked = jnp.sum(jnp.where((cls == label) & valid, logits, 0.0),
                     axis=-1, keepdims=True)                                 # (TB, 1)
    nll = lse - picked                                                       # (TB, 1)

    # Merge the two outputs into one lane-dense block: lane NUM_CLASSES = NLL.
    out_ref[...] = jnp.where(cls == NUM_CLASSES, nll, prob)


def prepare_classifier_params(weight, bias):
    """Build the padded/bf16 classifier once, at parameter-load time."""
    H = weight.shape[0]
    w_pad = jnp.zeros((H, LANE), jnp.bfloat16).at[:, :NUM_CLASSES].set(
        weight.astype(jnp.bfloat16))
    b_pad = jnp.zeros((1, LANE), jnp.float32).at[:, :NUM_CLASSES].set(
        bias.reshape(-1).astype(jnp.float32))
    return w_pad, b_pad


def _choose_tb(batch):
    """Row-tile size: multiple of 8, <=128, keep >=2 grid steps when possible."""
    b8 = -(-batch // 8) * 8
    if b8 <= 8:
        return 8
    tb = min(128, b8)
    if -(-b8 // tb) < 2:                      # single step: split for 2 TCs (v7x)
        tb = max(8, (-(-(b8 // 2) // 8)) * 8)
    return tb


def defect_model_forward(source_ids, hidden_states, w_pad, b_pad, labels):
    """Returns (loss, prob) mirroring DefectModel.forward(source_ids, labels)."""
    B, S = source_ids.shape
    H = hidden_states.shape[-1]

    # Last <eos> position per row (tiny [B, S] int reduce in XLA).  Clamp
    # malformed (no-EOS) rows to the last token so the gather stays in bounds.
    iota_s = jnp.arange(S, dtype=jnp.int32)[None, :]
    eos_mask = source_ids == EOS_TOKEN_ID
    last_pos = jnp.max(jnp.where(eos_mask, iota_s, -1), axis=1)
    last_pos = jnp.where(last_pos < 0, S - 1, last_pos)
    flat_idx = (jnp.arange(B, dtype=jnp.int32) * S + last_pos).astype(jnp.int32)

    # XLA gather: one contiguous (B, H) bf16 slab instead of B tiny in-kernel DMAs.
    hs_flat = hidden_states.reshape(B * S, H)
    vecs = jnp.take(hs_flat, flat_idx, axis=0)                # (B, H) bf16

    # Pad the batch to a multiple of TB (>= 8 sublanes) for lane/sublane-dense tiles.
    TB = _choose_tb(B)
    B_pad = (-(-B // TB)) * TB
    if B_pad != B:
        vecs = jnp.pad(vecs, ((0, B_pad - B), (0, 0)))
        labels = jnp.pad(labels.reshape(-1), (0, B_pad - B))
    labels2d = labels.reshape(B_pad, 1).astype(jnp.int32)

    grid_spec = pltpu.PrefetchScalarGridSpec(
        num_scalar_prefetch=0,
        grid=(B_pad // TB,),
        in_specs=[
            pl.BlockSpec((TB, H), lambda i: (i, 0)),          # gathered rows (bf16)
            pl.BlockSpec((TB, 1), lambda i: (i, 0)),          # labels
            pl.BlockSpec((H, LANE), lambda i: (0, 0)),        # weight (resident)
            pl.BlockSpec((1, LANE), lambda i: (0, 0)),        # bias   (resident)
        ],
        out_specs=pl.BlockSpec((TB, LANE), lambda i: (i, 0)), # prob + nll merged
    )

    out_pad = pl.pallas_call(
        defect_head_kernel,
        out_shape=jax.ShapeDtypeStruct((B_pad, LANE), jnp.float32),
        grid_spec=grid_spec,
        compiler_params=pltpu.CompilerParams(
            dimension_semantics=("parallel",)),
    )(vecs, labels2d, w_pad, b_pad)

    prob = out_pad[:B, :NUM_CLASSES]
    loss = jnp.mean(out_pad[:B, NUM_CLASSES])   # CrossEntropyLoss mean reduction
    return loss, prob


def _reference(source_ids, hidden_states, weight, bias, labels):
    B, S = source_ids.shape
    eos_mask = source_ids == EOS_TOKEN_ID
    iota_s = jnp.arange(S)[None, :]
    last_pos = jnp.max(jnp.where(eos_mask, iota_s, -1), axis=1)
    vec = hidden_states[jnp.arange(B), last_pos, :].astype(jnp.float32)
    logits = vec @ weight.astype(jnp.float32) + bias.astype(jnp.float32)
    prob = jax.nn.softmax(logits, axis=-1)
    logp = jax.nn.log_softmax(logits, axis=-1)
    loss = -jnp.mean(logp[jnp.arange(B), labels])
    return loss, prob


if __name__ == "__main__":
    B, S, H = 2, 16, 128  # batch, max_source_length, config.hidden_size
    key = jax.random.PRNGKey(0)
    k_ids, k_hs, k_w, k_b, k_lbl = jax.random.split(key, 5)

    # source_ids: random tokens in [3, 100), one <eos> per row at the same
    # position, pad at the tail (same eos count per example, as the model requires).
    source_ids = jax.random.randint(k_ids, (B, S), 3, 100, dtype=jnp.int32)
    source_ids = source_ids.at[:, S - 2].set(EOS_TOKEN_ID)
    source_ids = source_ids.at[:, S - 1].set(PAD_TOKEN_ID)

    # TODO(synk): stand-in for the external encoder's last decoder hidden states
    # (kept in bf16 in HBM; only the B gathered rows reach the kernel).
    hidden_states = jax.random.normal(
        k_hs, (B, S, H), dtype=jnp.float32).astype(jnp.bfloat16)

    # classifier = nn.Linear(hidden_size, 2), deterministic init
    weight = jax.random.normal(k_w, (H, 2), dtype=jnp.float32) * 0.02
    bias = jax.random.normal(k_b, (2,), dtype=jnp.float32) * 0.02

    labels = jax.random.randint(k_lbl, (B,), 0, 2, dtype=jnp.int32)

    # Padded/bf16 classifier built once (parameter-load time), reused per call.
    w_pad, b_pad = prepare_classifier_params(weight, bias)

    loss, prob = defect_model_forward(source_ids, hidden_states, w_pad, b_pad, labels)
    jax.block_until_ready((loss, prob))

    ref_loss, ref_prob = _reference(source_ids, hidden_states, weight, bias, labels)
    # Tolerance covers intentional bf16 weight cast for the MXU (f32 reference).
    assert np.allclose(np.asarray(prob), np.asarray(ref_prob), atol=2e-3), "prob mismatch"
    assert np.allclose(float(loss), float(ref_loss), atol=2e-3), "loss mismatch"
    assert np.allclose(np.asarray(prob).sum(-1), 1.0, atol=1e-5), "prob not normalized"

    print("KERNEL_OK")
</pallas_src>

<mosaic_0001>
module attributes {stable_mosaic.version = 11 : i64} {
  func.func @defect_head_kernel(%arg0: i32, %arg1: memref<8x128xbf16, #tpu.memory_space<vmem>>, %arg2: memref<8x1xi32, #tpu.memory_space<vmem>>, %arg3: memref<128x128xbf16, #tpu.memory_space<vmem>>, %arg4: memref<1x128xf32, #tpu.memory_space<vmem>>, %arg5: memref<8x128xf32, #tpu.memory_space<vmem>>) attributes {dimension_semantics = [#tpu.dimension_semantics<parallel>], iteration_bounds = array<i64: 1>, scalar_prefetch = 0 : i64, scratch_operands = 0 : i64, tpu.core_type = #tpu.core_type<tc>, window_params = [{transform_indices = @transform_0, window_bounds = array<i64: 8, 128>}, {transform_indices = @transform_1, window_bounds = array<i64: 8, 1>}, {pipeline_mode = #tpu.pipeline_mode<synchronous>, transform_indices = @transform_2, window_bounds = array<i64: 128, 128>}, {pipeline_mode = #tpu.pipeline_mode<synchronous>, transform_indices = @transform_3, window_bounds = array<i64: 1, 128>}, {transform_indices = @transform_4, window_bounds = array<i64: 8, 128>}]} {
    %c0 = arith.constant 0 : index
    %c0_0 = arith.constant 0 : index
    %0 = vector.load %arg1[%c0, %c0_0] : memref<8x128xbf16, #tpu.memory_space<vmem>>, vector<8x128xbf16>
    %c0_1 = arith.constant 0 : index
    %c0_2 = arith.constant 0 : index
    %1 = vector.load %arg3[%c0_1, %c0_2] : memref<128x128xbf16, #tpu.memory_space<vmem>>, vector<128x128xbf16>
    %cst = arith.constant dense<0.000000e+00> : vector<8x128xf32>
    %2 = tpu.matmul %0, %1, %cst {dimension_numbers = #tpu.dot_dimension_numbers<[1], [0], [0], [1], [0, 0, 1, 1], [], []>} : vector<8x128xbf16>, vector<128x128xbf16>, vector<8x128xf32> -> vector<8x128xf32>
    %c0_3 = arith.constant 0 : index
    %c0_4 = arith.constant 0 : index
    %3 = vector.load %arg4[%c0_3, %c0_4] : memref<1x128xf32, #tpu.memory_space<vmem>>, vector<1x128xf32>
    %4 = vector.broadcast %3 : vector<1x128xf32> to vector<8x128xf32>
    %5 = arith.addf %2, %4 : vector<8x128xf32>
    %6 = tpu.iota {dimensions = array<i32: 1>} : vector<8x128xi32>
    %c2_i32 = arith.constant 2 : i32
    %7 = vector.broadcast %c2_i32 : i32 to vector<8x128xi32>
    %8 = arith.cmpi slt, %6, %7 : vector<8x128xi32>
    %cst_5 = arith.constant -1.000000e+30 : f32
    %9 = vector.broadcast %cst_5 : f32 to vector<8x128xf32>
    %10 = arith.select %8, %5, %9 : vector<8x128xi1>, vector<8x128xf32>
    %cst_6 = arith.constant dense<0xFF800000> : vector<8xf32>
    %11 = vector.multi_reduction <maximumf>, %10, %cst_6 [1] : vector<8x128xf32> to vector<8xf32>
    %12 = vector.shape_cast %11 : vector<8xf32> to vector<8x1xf32>
    %13 = vector.broadcast %12 : vector<8x1xf32> to vector<8x128xf32>
    %14 = arith.subf %10, %13 : vector<8x128xf32>
    %15 = math.exp %14 : vector<8x128xf32>
    %cst_7 = arith.constant 0.000000e+00 : f32
    %16 = vector.broadcast %cst_7 : f32 to vector<8x128xf32>
    %17 = arith.select %8, %15, %16 : vector<8x128xi1>, vector<8x128xf32>
    %cst_8 = arith.constant dense<0.000000e+00> : vector<8xf32>
    %18 = vector.multi_reduction <add>, %17, %cst_8 [1] : vector<8x128xf32> to vector<8xf32>
    %19 = vector.shape_cast %18 : vector<8xf32> to vector<8x1xf32>
    %20 = vector.broadcast %19 : vector<8x1xf32> to vector<8x128xf32>
    %21 = arith.divf %17, %20 : vector<8x128xf32>
    %22 = math.log %19 : vector<8x1xf32>
    %23 = arith.addf %12, %22 : vector<8x1xf32>
    %c0_9 = arith.constant 0 : index
    %c0_10 = arith.constant 0 : index
    %24 = vector.load %arg2[%c0_9, %c0_10] : memref<8x1xi32, #tpu.memory_space<vmem>>, vector<8x1xi32>
    %25 = vector.broadcast %24 : vector<8x1xi32> to vector<8x128xi32>
    %26 = arith.cmpi eq, %6, %25 : vector<8x128xi32>
    %27 = arith.andi %26, %8 : vector<8x128xi1>
    %cst_11 = arith.constant 0.000000e+00 : f32
    %28 = vector.broadcast %cst_11 : f32 to vector<8x128xf32>
    %29 = arith.select %27, %5, %28 : vector<8x128xi1>, vector<8x128xf32>
    %cst_12 = arith.constant dense<0.000000e+00> : vector<8xf32>
    %30 = vector.multi_reduction <add>, %29, %cst_12 [1] : vector<8x128xf32> to vector<8xf32>
    %31 = vector.shape_cast %30 : vector<8xf32> to vector<8x1xf32>
    %32 = arith.subf %23, %31 : vector<8x1xf32>
    %c2_i32_13 = arith.constant 2 : i32
    %33 = vector.broadcast %c2_i32_13 : i32 to vector<8x128xi32>
    %34 = arith.cmpi eq, %6, %33 : vector<8x128xi32>
    %35 = vector.shape_cast %32 : vector<8x1xf32> to vector<8x1xf32>
    %36 = vector.broadcast %35 : vector<8x1xf32> to vector<8x128xf32>
    %37 = arith.select %34, %36, %21 : vector<8x128xi1>, vector<8x128xf32>
    %c0_14 = arith.constant 0 : index
    %c0_15 = arith.constant 0 : index
    %38 = vector.load %arg5[%c0_14, %c0_15] : memref<8x128xf32, #tpu.memory_space<vmem>>, vector<8x128xf32>
    tpu.vector_store %arg5[%c0_14, %c0_15], %37 {strides = array<i32>} : memref<8x128xf32, #tpu.memory_space<vmem>>, vector<8x128xf32>,
    return
  }
  func.func @transform_0(%arg0: i32) -> (i32, i32) {
    %c0_i32 = arith.constant 0 : i32
    %c0_i32_0 = arith.constant 0 : i32
    return %arg0, %c0_i32 : i32, i32
  }
  func.func @transform_1(%arg0: i32) -> (i32, i32) {
    %c0_i32 = arith.constant 0 : i32
    %c0_i32_0 = arith.constant 0 : i32
    return %arg0, %c0_i32 : i32, i32
  }
  func.func @transform_2(%arg0: i32) -> (i32, i32) {
    %c0_i32 = arith.constant 0 : i32
    %c0_i32_0 = arith.constant 0 : i32
    %c0_i32_1 = arith.constant 0 : i32
    return %c0_i32, %c0_i32_0 : i32, i32
  }
  func.func @transform_3(%arg0: i32) -> (i32, i32) {
    %c0_i32 = arith.constant 0 : i32
    %c0_i32_0 = arith.constant 0 : i32
    %c0_i32_1 = arith.constant 0 : i32
    return %c0_i32, %c0_i32_0 : i32, i32
  }
  func.func @transform_4(%arg0: i32) -> (i32, i32) {
    %c0_i32 = arith.constant 0 : i32
    %c0_i32_0 = arith.constant 0 : i32
    return %arg0, %c0_i32 : i32, i32
  }
}

</mosaic_0001>

<bundles_post_ra>
// kernel: tpu_custom_call.1
= control target key start
LH: loop header
LB: loop body
LE: loop exit
PB: predicated region body
PF: predicated region fallthrough
CT: control target
= control target key end

     0   :  { %9 = vsyncpa [#allocation3], 0  ;;  %s329_s0 = inlined_call_operand.vmem [shape: bf16[8,128], index: 0, kind: input, shape index: {}]   ;;  %s330_s1 = inlined_call_operand.vmem [shape: s32[8,1], index: 1, kind: input, shape index: {}]   ;;  %s331_s2 = inlined_call_operand.hbm [shape: bf16[128,128], index: 2, kind: input, shape index: {}]   ;;  %s332_s3 = inlined_call_operand.vmem [shape: f32[1,128], index: 3, kind: input, shape index: {}]   ;;  %s333_s4 = inlined_call_operand.hbm [shape: f32[8,128], index: 4, kind: output, shape index: {}]  }
   0x1   :  { %10 = vsyncpa [#allocation4], 0  ;;  %s19_s17 = sshll.u32 %s331_s2, 4  ;;  %s281_s18 = smov [#allocation2]   ;;  %s20_s17 = int_to_ptr.hbm [resolvable:$true] %s19_s17 }
   0x2   :  { %s21_s19 = sshll.u32 %s281_s18, 4  ;;  %s282_s20 = smov 64   ;;  %s22_s19 = int_to_ptr.vmem [resolvable:$true] %s21_s19 }
   0x3   :  { %s283_s21 = smov 4  }
   0x4   :  { %27 = dma.hbm_to_vmem [thread:$0]  %s20_s17, 1024, %s22_s19, [#allocation3], %s282_s20, %s282_s20, %s283_s21  }
   0x5   :  { %277 = dma.done.wait [#allocation3], 1024  }
   0x6   :  { %278 = vsyncadd [#allocation3], 4294966272  ;;  %v215_v0 = vld [vmem:[#allocation2 + $0x38] sm:$0xff]  ;;  %v214_v1 = vld [vmem:[#allocation2 + $0x30] sm:$0xff]  ;;  %v284_v9 = vmov 0   ;;  %v116_v10 = vlaneseq  ;;  %s166_s28 = sshll.u32 %s333_s4, 4  ;;  %s167_s28 = int_to_ptr.hbm [resolvable:$true] %s166_s28 }
   0x7   :  { %103 = vmatpush.bf16.msra.mxu0 %v215_v0  ;;  %v213_v2 = vld [vmem:[#allocation2 + $0x28] sm:$0xff]  ;;  %v212_v3 = vld [vmem:[#allocation2 + $0x20] sm:$0xff]  ;;  %v211_v4 = vld [vmem:[#allocation2 + $0x18] sm:$0xff]  ;;  %221 = vset.pattern.permute.xlu0 %v284_v9 }
   0x8   :  { %v210_v5 = vld [vmem:[#allocation2 + $0x10] sm:$0xff]  ;;  %v209_v6 = vld [vmem:[#allocation2 + $0x8] sm:$0xff]  ;;  %v208_v7 = vld [vmem:[#allocation2] sm:$0xff]  ;;  %v117_v11 = vand.u32 127, %v116_v10 }
   0x9   :  { %v34_v8 = vld [vmem:[%s329_s0] sm:$0xf]  ;;  %s285_s0 = smov [#allocation5]  }
   0xa   :  { %v222_v12 = vld [vmem:[%s332_s3] ss:$0 sm:$0xff]  ;;  %vm118_vm0 = vcmp.lt.s32.totalorder %v117_v11, 2  ;;  %vm156_vm7 = vcmp.eq.s32.totalorder %v117_v11, 2 }
   0xb   :  { %104 = vmatpush.bf16.msra.mxu0 %v214_v1  ;;  %v146_v17 = vld [vmem:[%s330_s1] sm:$0xff]  ;;  %s164_s1 = sshll.u32 %s285_s0, 4  ;;  %s165_s1 = int_to_ptr.vmem [resolvable:$true] %s164_s1 }
   0xf   :  { %105 = vmatpush.bf16.msra.mxu0 %v213_v2 }
  0x13   :  { %106 = vmatpush.bf16.msra.mxu0 %v212_v3 }
  0x17   :  { %107 = vmatpush.bf16.msra.mxu0 %v211_v4 }
  0x1b   :  { %108 = vmatpush.bf16.msra.mxu0 %v210_v5 }
  0x1f   :  { %109 = vmatpush.bf16.msra.mxu0 %v209_v6 }
  0x23   :  { %110 = vmatpush.bf16.msra.mxu0 %v208_v7 }
  0x26   :  { %111 = vmatmul.bf16.vlgmr.msra.gmra.mxu0 %v34_v8 }
  0xa3   :  { %v112_v13 = vpop.f32.mrf.mxu0 }
  0xa4   :  { %v113_v14 = vadd.f32 %v222_v12, %v112_v13 }
  0xa6   :  { %v119_v15 = vsel %vm118_vm0, %v113_v14, -1e+30 }
  0xa7   :  { %120 = vmax.xlane.f32.xlu0 %v119_v15 }
  0xab   :  { %v114_v16 = vpop.f32.mrf.mxu0 }
  0xbb   :  { %148 = vperm.xlu0 %221, %v146_v17  }
 0x11a   :  { %v121_v18 = vpop.xlane.xlu0 %120 }
 0x11b   :  { %v122_v19 = vsub.f32 %v119_v15, %v121_v18 }
 0x11d   :  { %v123_v20 = vmul.f32 1.442695, %v122_v19 }
 0x11f   :  { %223 = vpow2.f32 %v123_v20 }
 0x125   :  { %v224_v21 = vpop.eup %223 }
 0x126   :  { %v125_v22 = vsel %vm118_vm0, %v224_v21, 0.0 }
 0x127   :  { %126 = vadd.xlane.f32.xlu1 %v125_v22 }
 0x12d   :  { %v149_v23 = vpop.permute.xlu0 %148 }
 0x12e   :  { %vm150_vm1 = vcmp.eq.s32.totalorder %v117_v11, %v149_v23 }
 0x12f   :  { %vm151_vm2 = vmand %vm150_vm1, %vm118_vm0 }
 0x130   :  { %v152_v24 = vsel %vm151_vm2, %v113_v14, 0.0 }
 0x131   :  { %153 = vadd.xlane.f32.xlu1 %v152_v24 }
 0x19a   :  { %v127_v25 = vpop.xlane.xlu1 %126 }
 0x19b   :  { %225 = vrcp.f32 %v127_v25  ;;  %v139_v31 = vand.u32 2147483648, %v127_v25  ;;  %v137_v33 = vand.u32 2147483647, %v127_v25  ;;  %vm133_vm4 = vweird.f32 %v127_v25 }
 0x19c   :  { %227 = vlog2.f32 %v127_v25 }
 0x19d   :  { %v140_v36 = vor.u32 1.1754944e-38, %v139_v31  ;;  %vm138_vm6 = vcmp.eq.f32.partialorder %v137_v33, 8.507059e+37 }
 0x1a1   :  { %v226_v26 = vpop.eup %225 }
 0x1a2   :  { %v228_v27 = vpop.eup %227  ;;  %v129_v28 = vmul.f32 %v226_v26, %v127_v25  ;;  %vm134_vm3 = vweird.f32 %v226_v26 }
 0x1a3   :  { %v144_v30 = vmul.f32 0.6931472, %v228_v27  ;;  %vm135_vm5 = vmor %vm133_vm4, %vm134_vm3 }
 0x1a4   :  { %v130_v29 = vsub.f32 1.0, %v129_v28  ;;  %v154_v37 = vpop.xlane.xlu1 %153 }
 0x1a5   :  { %v145_v35 = vadd.f32 %v144_v30, %v121_v18 }
 0x1a6   :  { %v131_v32 = vmul.f32 %v226_v26, %v130_v29 }
 0x1a7   :  { %v155_v40 = vsub.f32 %v145_v35, %v154_v37 }
 0x1a8   :  { %v132_v34 = vadd.f32 %v226_v26, %v131_v32 }
 0x1aa   :  { %v136_v38 = vsel %vm135_vm5, %v226_v26, %v132_v34 }
 0x1ab   :  { %v141_v39 = vsel %vm138_vm6, %v140_v36, %v136_v38 }
 0x1ac   :  { %v142_v41 = vmul.f32 %v141_v39, %v125_v22 }
 0x1ae   :  { %v157_v42 = vsel %vm156_vm7, %v155_v40, %v142_v41 }
 0x1af   :  { %158 = vst [vmem:[#allocation5] sm:$0xff] %v157_v42 }
 0x1b0   :  { %169 = dma.vmem_to_hbm [thread:$0]  %s165_s1, 128, %s167_s28, [#allocation4]  }
 0x1b1   :  { %279 = dma.done.wait [#allocation4], 128  }
 0x1b2   :  { %280 = vsyncadd [#allocation4], 4294967168 }
 0x1b3   :  { %174 = vsyncpa [#allocation3], 1 }
 0x1b4   :  { %175 = vsyncpa [#allocation4], 1 }

</bundles_post_ra>
